<compile_context>
chip_gen: v6e
topology: v6e:2x2x1
jax: 0.10.0
libtpu: 0.0.40
codegen_flags: <defaults>
</compile_context>

<pallas_src>
import functools

import jax
import jax.numpy as jnp
from jax.experimental import pallas as pl
from jax.experimental.pallas import tpu as pltpu


# ----------------------------------------------------------------------------
# Static alignment metadata (trace-time Python ints — never captured tracers)
# ----------------------------------------------------------------------------
def _align_meta(src_len, dst_len):
    """(pad, padded_len) for AlignSubNet('avg_pool') semantics."""
    if src_len == dst_len:
        return 0, src_len
    pool = src_len // dst_len + (1 if src_len % dst_len else 0)
    lpad = pool * dst_len
    return lpad - src_len, lpad


# ----------------------------------------------------------------------------
# Fused kernel: align('avg_pool') + stand-in fusion head, single invocation
# ----------------------------------------------------------------------------
def _amio_kernel(meta, t_ref, a_ref, v_ref,
                 w1t_ref, w1a_ref, w1v_ref, b1_ref, w2_ref, b2_ref, o_ref):
    """meta: ((pad, lpad) per modality) — compile-time Python literals.
    t/a/v_ref: (B, L, D) full-array VMEM blocks.
    w1{t,a,v}_ref: (D*, H), b1_ref: (1, H), w2_ref: (1, H) VMEM.
    b2_ref: (1,) SMEM scalar.  o_ref: (1, B) lane-dense output."""

    def pooled_mean(x, pad, lpad):
        # mean over padded time axis == (sum + pad * last_frame) / lpad,
        # identical to pad-with-last-frame -> avg_pool -> temporal mean.
        s = jnp.sum(x, axis=1)
        if pad:
            s = s + float(pad) * x[:, -1, :]
        return s * (1.0 / float(lpad))

    t = pooled_mean(t_ref[...], *meta[0])   # (B, Dt)
    a = pooled_mean(a_ref[...], *meta[1])   # (B, Da)
    v = pooled_mean(v_ref[...], *meta[2])   # (B, Dv)

    # Three tiny MXU dots + VPU adds.  No in-kernel lane concatenate: at
    # K<=32 / N=32 the MXU is ~0.1% utilized, and the concat's XLU lane
    # relayout cost more than the adds it removed.
    h = jnp.dot(t, w1t_ref[...], preferred_element_type=jnp.float32)
    h = h + jnp.dot(a, w1a_ref[...], preferred_element_type=jnp.float32)
    h = h + jnp.dot(v, w1v_ref[...], preferred_element_type=jnp.float32)
    h = jnp.maximum(h + b1_ref[...], 0.0)                     # (B, H)

    # N=1 projection on the VPU (multiply) + lane reduce.
    logit = jnp.sum(h * w2_ref[...], axis=-1) + b2_ref[0]     # (B,)
    o_ref[...] = logit[None, :]                                # (1, B)


# ----------------------------------------------------------------------------
# AMIO forward (need_model_aligned=True path) — exactly one XLA op emitted
# ----------------------------------------------------------------------------
def amio_forward(text_x, audio_x, video_x, params):
    B, dst_len, Dt = text_x.shape
    Da = audio_x.shape[2]
    Dv = video_x.shape[2]
    H = params["w1_t"].shape[1]
    meta = tuple(_align_meta(x.shape[1], dst_len)
                 for x in (text_x, audio_x, video_x))

    def full_spec(arr):
        n = arr.ndim
        return pl.BlockSpec(arr.shape, lambda _n=n: (0,) * _n)

    # Advisory cost hint: pooling adds + first-layer dots + head.
    in_elems = text_x.size + audio_x.size + video_x.size
    w_elems = (params["w1_t"].size + params["w1_a"].size + params["w1_v"].size
               + params["b1"].size + params["w2"].size + params["b2"].size)
    cost = pl.CostEstimate(
        flops=in_elems + 2 * B * (Dt + Da + Dv) * H + 4 * B * H,
        transcendentals=0,
        bytes_accessed=4 * (in_elems + w_elems + B),
    )

    out_row = pl.pallas_call(
        functools.partial(_amio_kernel, meta),
        out_shape=jax.ShapeDtypeStruct((1, B), jnp.float32),
        in_specs=[full_spec(text_x), full_spec(audio_x), full_spec(video_x),
                  full_spec(params["w1_t"]), full_spec(params["w1_a"]),
                  full_spec(params["w1_v"]), full_spec(params["b1"]),
                  full_spec(params["w2"]),
                  pl.BlockSpec(memory_space=pltpu.MemorySpace.SMEM)],
        out_specs=pl.BlockSpec((1, B), lambda: (0, 0)),
        cost_estimate=cost,
    )(text_x, audio_x, video_x,
      params["w1_t"], params["w1_a"], params["w1_v"],
      params["b1"], params["w2"], params["b2"])

    return out_row.reshape(B, 1)


def init_params(key, dt, da, dv, hidden):
    """Emits kernel-ready layouts so the forward pass does zero plumbing:
    w1_* : (D*, H)   b1 : (1, H)   w2 : (1, H) row   b2 : (1,) SMEM scalar."""
    ks = jax.random.split(key, 5)

    def xav(k, shape):
        fan_in, fan_out = shape
        scale = jnp.sqrt(2.0 / (fan_in + fan_out))
        return jax.random.normal(k, shape, jnp.float32) * scale

    return {
        "w1_t": xav(ks[0], (dt, hidden)),
        "w1_a": xav(ks[1], (da, hidden)),
        "w1_v": xav(ks[2], (dv, hidden)),
        "b1":   jnp.zeros((1, hidden), jnp.float32),
        "w2":   xav(ks[3], (hidden, 1)).reshape(1, hidden),
        "b2":   jnp.zeros((1,), jnp.float32),
    }


if __name__ == "__main__":
    key = jax.random.PRNGKey(0)
    k_t, k_a, k_v, k_p = jax.random.split(key, 4)

    B, Lt, Dt = 2, 8, 32
    La, Da = 20, 16     # not a multiple of Lt -> exercises pad-with-last-frame
    Lv, Dv = 40, 20     # exact multiple of Lt
    hidden = 32

    text_x = jax.random.normal(k_t, (B, Lt, Dt), jnp.float32)
    audio_x = jax.random.normal(k_a, (B, La, Da), jnp.float32)
    video_x = jax.random.normal(k_v, (B, Lv, Dv), jnp.float32)

    params = init_params(k_p, Dt, Da, Dv, hidden)

    out = amio_forward(text_x, audio_x, video_x, params)
    jax.block_until_ready(out)

    # Pure-JAX reference with the original two-stage semantics
    # (align via pad + group-mean, then the stand-in fusion head).
    def ref_align(x, dst_len):
        Bx, L, D = x.shape
        if L == dst_len:
            return x
        if L % dst_len != 0:
            pad = dst_len - L % dst_len
            x = jnp.concatenate(
                [x, jnp.broadcast_to(x[:, -1:, :], (Bx, pad, D))], axis=1)
        pool = x.shape[1] // dst_len
        return x.reshape(Bx, pool, dst_len, D).mean(axis=1)

    ta = ref_align(text_x, Lt)
    aa = ref_align(audio_x, Lt)
    va = ref_align(video_x, Lt)
    h = (ta.mean(1) @ params["w1_t"] + aa.mean(1) @ params["w1_a"]
         + va.mean(1) @ params["w1_v"] + params["b1"])
    ref = jnp.maximum(h, 0.0) @ params["w2"].T + params["b2"][None, :]

    assert out.shape == (B, 1)
    assert jnp.allclose(out, ref, atol=1e-4, rtol=1e-4), (out, ref)
    print("KERNEL_OK")
</pallas_src>

<mosaic_0001>
module attributes {stable_mosaic.version = 11 : i64} {
  func.func @_amio_kernel(%arg0: memref<2x8x32xf32, #tpu.memory_space<vmem>>, %arg1: memref<2x20x16xf32, #tpu.memory_space<vmem>>, %arg2: memref<2x40x20xf32, #tpu.memory_space<vmem>>, %arg3: memref<32x32xf32, #tpu.memory_space<vmem>>, %arg4: memref<16x32xf32, #tpu.memory_space<vmem>>, %arg5: memref<20x32xf32, #tpu.memory_space<vmem>>, %arg6: memref<1x32xf32, #tpu.memory_space<vmem>>, %arg7: memref<1x32xf32, #tpu.memory_space<vmem>>, %arg8: memref<1xf32, #tpu.memory_space<smem>>, %arg9: memref<1x2xf32, #tpu.memory_space<vmem>>) attributes {dimension_semantics = [], scalar_prefetch = 0 : i64, scratch_operands = 0 : i64, tpu.core_type = #tpu.core_type<tc>} {
    %c0 = arith.constant 0 : index
    %c0_0 = arith.constant 0 : index
    %c0_1 = arith.constant 0 : index
    %0 = vector.load %arg0[%c0, %c0_0, %c0_1] : memref<2x8x32xf32, #tpu.memory_space<vmem>>, vector<2x8x32xf32>
    %cst = arith.constant dense<0.000000e+00> : vector<2x32xf32>
    %1 = vector.multi_reduction <add>, %0, %cst [1] : vector<2x8x32xf32> to vector<2x32xf32>
    %cst_2 = arith.constant 1.250000e-01 : f32
    %2 = vector.broadcast %cst_2 : f32 to vector<2x32xf32>
    %3 = arith.mulf %1, %2 : vector<2x32xf32>
    %c0_3 = arith.constant 0 : index
    %c0_4 = arith.constant 0 : index
    %c0_5 = arith.constant 0 : index
    %4 = vector.load %arg1[%c0_3, %c0_4, %c0_5] : memref<2x20x16xf32, #tpu.memory_space<vmem>>, vector<2x20x16xf32>
    %cst_6 = arith.constant dense<0.000000e+00> : vector<2x16xf32>
    %5 = vector.multi_reduction <add>, %4, %cst_6 [1] : vector<2x20x16xf32> to vector<2x16xf32>
    %6 = vector.extract_strided_slice %4 {offsets = [0, 19, 0], sizes = [2, 1, 16], strides = [1, 1, 1]} : vector<2x20x16xf32> to vector<2x1x16xf32>
    %7 = vector.shape_cast %6 : vector<2x1x16xf32> to vector<2x16xf32>
    %cst_7 = arith.constant 4.000000e+00 : f32
    %8 = vector.broadcast %cst_7 : f32 to vector<2x16xf32>
    %9 = arith.mulf %8, %7 : vector<2x16xf32>
    %10 = arith.addf %5, %9 : vector<2x16xf32>
    %cst_8 = arith.constant 0.0416666679 : f32
    %11 = vector.broadcast %cst_8 : f32 to vector<2x16xf32>
    %12 = arith.mulf %10, %11 : vector<2x16xf32>
    %c0_9 = arith.constant 0 : index
    %c0_10 = arith.constant 0 : index
    %c0_11 = arith.constant 0 : index
    %13 = vector.load %arg2[%c0_9, %c0_10, %c0_11] : memref<2x40x20xf32, #tpu.memory_space<vmem>>, vector<2x40x20xf32>
    %cst_12 = arith.constant dense<0.000000e+00> : vector<2x20xf32>
    %14 = vector.multi_reduction <add>, %13, %cst_12 [1] : vector<2x40x20xf32> to vector<2x20xf32>
    %cst_13 = arith.constant 2.500000e-02 : f32
    %15 = vector.broadcast %cst_13 : f32 to vector<2x20xf32>
    %16 = arith.mulf %14, %15 : vector<2x20xf32>
    %c0_14 = arith.constant 0 : index
    %c0_15 = arith.constant 0 : index
    %17 = vector.load %arg3[%c0_14, %c0_15] : memref<32x32xf32, #tpu.memory_space<vmem>>, vector<32x32xf32>
    %cst_16 = arith.constant dense<0.000000e+00> : vector<2x32xf32>
    %18 = tpu.matmul %3, %17, %cst_16 {dimension_numbers = #tpu.dot_dimension_numbers<[1], [0], [0], [1], [0, 0, 1, 1], [], []>} : vector<2x32xf32>, vector<32x32xf32>, vector<2x32xf32> -> vector<2x32xf32>
    %c0_17 = arith.constant 0 : index
    %c0_18 = arith.constant 0 : index
    %19 = vector.load %arg4[%c0_17, %c0_18] : memref<16x32xf32, #tpu.memory_space<vmem>>, vector<16x32xf32>
    %cst_19 = arith.constant dense<0.000000e+00> : vector<2x32xf32>
    %20 = tpu.matmul %12, %19, %cst_19 {dimension_numbers = #tpu.dot_dimension_numbers<[1], [0], [0], [1], [0, 0, 1, 1], [], []>} : vector<2x16xf32>, vector<16x32xf32>, vector<2x32xf32> -> vector<2x32xf32>
    %21 = arith.addf %18, %20 : vector<2x32xf32>
    %c0_20 = arith.constant 0 : index
    %c0_21 = arith.constant 0 : index
    %22 = vector.load %arg5[%c0_20, %c0_21] : memref<20x32xf32, #tpu.memory_space<vmem>>, vector<20x32xf32>
    %cst_22 = arith.constant dense<0.000000e+00> : vector<2x32xf32>
    %23 = tpu.matmul %16, %22, %cst_22 {dimension_numbers = #tpu.dot_dimension_numbers<[1], [0], [0], [1], [0, 0, 1, 1], [], []>} : vector<2x20xf32>, vector<20x32xf32>, vector<2x32xf32> -> vector<2x32xf32>
    %24 = arith.addf %21, %23 : vector<2x32xf32>
    %c0_23 = arith.constant 0 : index
    %c0_24 = arith.constant 0 : index
    %25 = vector.load %arg6[%c0_23, %c0_24] : memref<1x32xf32, #tpu.memory_space<vmem>>, vector<1x32xf32>
    %26 = vector.broadcast %25 : vector<1x32xf32> to vector<2x32xf32>
    %27 = arith.addf %24, %26 : vector<2x32xf32>
    %cst_25 = arith.constant 0.000000e+00 : f32
    %28 = vector.broadcast %cst_25 : f32 to vector<2x32xf32>
    %29 = arith.maximumf %27, %28 : vector<2x32xf32>
    %c0_26 = arith.constant 0 : index
    %c0_27 = arith.constant 0 : index
    %30 = vector.load %arg7[%c0_26, %c0_27] : memref<1x32xf32, #tpu.memory_space<vmem>>, vector<1x32xf32>
    %31 = vector.broadcast %30 : vector<1x32xf32> to vector<2x32xf32>
    %32 = arith.mulf %29, %31 : vector<2x32xf32>
    %cst_28 = arith.constant dense<0.000000e+00> : vector<2xf32>
    %33 = vector.multi_reduction <add>, %32, %cst_28 [1] : vector<2x32xf32> to vector<2xf32>
    %c0_29 = arith.constant 0 : index
    %34 = memref.load %arg8[%c0_29] : memref<1xf32, #tpu.memory_space<smem>>
    %35 = vector.broadcast %34 : f32 to vector<2xf32>
    %36 = arith.addf %33, %35 : vector<2xf32>
    %37 = vector.shape_cast %36 : vector<2xf32> to vector<1x2xf32>
    %c0_30 = arith.constant 0 : index
    %c0_31 = arith.constant 0 : index
    %38 = vector.load %arg9[%c0_30, %c0_31] : memref<1x2xf32, #tpu.memory_space<vmem>>, vector<1x2xf32>
    tpu.vector_store %arg9[%c0_30, %c0_31], %37 {strides = array<i32>} : memref<1x2xf32, #tpu.memory_space<vmem>>, vector<1x2xf32>,
    return
  }
}

</mosaic_0001>

<bundles_post_ra>
// kernel: tpu_custom_call.1
= control target key start
LH: loop header
LB: loop body
LE: loop exit
PB: predicated region body
PF: predicated region fallthrough
CT: control target
= control target key end

     0   :  { %vm59_vm0 = vcmask 130048   ;;  %v492_v2 = vmov 0.0   ;;  %vm63_vm1 = vcmask 125952   ;;  %vm36_vm2 = vcmask 261120   ;;  %s685_s0 = inlined_call_operand.vmem [shape: f32[2,8,32], index: 0, kind: input, shape index: {}]   ;;  %s686_s1 = inlined_call_operand.vmem [shape: f32[2,20,16], index: 1, kind: input, shape index: {}]   ;;  %s687_s2 = inlined_call_operand.vmem [shape: f32[2,40,20], index: 2, kind: input, shape index: {}]   ;;  %s688_s3 = inlined_call_operand.vmem [shape: f32[32,32], index: 3, kind: input, shape index: {}]   ;;  %s689_s4 = inlined_call_operand.vmem [shape: f32[16,32], index: 4, kind: input, shape index: {}]   ;;  %s690_s5 = inlined_call_operand.vmem [shape: f32[20,32], index: 5, kind: input, shape index: {}]   ;;  %s691_s6 = inlined_call_operand.vmem [shape: f32[1,32], index: 6, kind: input, shape index: {}]   ;;  %s692_s7 = inlined_call_operand.vmem [shape: f32[1,32], index: 7, kind: input, shape index: {}]   ;;  %s693_s8 = inlined_call_operand.<no memory space> [shape: f32[1], index: 8, kind: input, shape index: {}]   ;;  %s694_s9 = inlined_call_operand.hbm [shape: f32[1,2], index: 9, kind: output, shape index: {}]  }
   0x1   :  { %v135_v0 = vld [vmem:[%s688_s3 + $0x18] sm:$0xff]  ;;  %v137_v1 = vld [vmem:[%s689_s4 + $0x8] sm:$0xff]  ;;  %447 = vmatprep.subr.mxu1 %v492_v2  ;;  %440 = vmatprep.subr.mxu0 %v492_v2  ;;  %v134_v3 = vld [vmem:[%s688_s3 + $0x10] sm:$0xff]  ;;  %vm99_vm3 = vcmask 162816   ;;  %vm493_vm4 = vmmov 0  }
   0x2   :  { %v133_v4 = vld [vmem:[%s688_s3 + $0x8] sm:$0xff]  ;;  %v136_v5 = vld [vmem:[%s689_s4] sm:$0xff]  ;;  %448 = vmatpush3.msra.mxu1 %v135_v0  ;;  %441 = vmatpush3.msra.mxu0 %v137_v1  ;;  %v571_v8 = vld [vmem:[%s686_s1 + $0x10] sm:$0xf] }
   0x3   :  { %v53_v6 = vld [vmem:[%s686_s1] sm:$0xff]  ;;  %v54_v7 = vld [vmem:[%s686_s1 + $0x8] sm:$0xff]  ;;  %449 = vmatprep.subr.mxu1 %v492_v2  ;;  %442 = vmatprep.subr.mxu0 %v492_v2  ;;  %v56_v9 = vld [vmem:[%s686_s1 + $0x18] sm:$0xff]  ;;  %v64_v15 = vsel %vm63_vm1, %v571_v8, 0.0 }
   0x4   :  { %v57_v10 = vld [vmem:[%s686_s1 + $0x20] sm:$0xff]  ;;  %v584_v11 = vld [vmem:[%s686_s1 + $0x28] sm:$0xf]  ;;  %v60_v12 = vsel %vm59_vm0, %v53_v6, 0.0  ;;  %v61_v13 = vsel %vm59_vm0, %v54_v7, 0.0  ;;  %450 = vmatpush3.msra.mxu1 %v134_v3  ;;  %443 = vmatpush3.msra.mxu0 %v136_v5  ;;  %v72_v16 = vsel %vm59_vm0, %v56_v9, 0.0 }
   0x5   :  { %v62_v14 = vadd.f32 %v61_v13, %v60_v12  ;;  %v73_v17 = vsel %vm59_vm0, %v57_v10, 0.0  ;;  %v34_v18 = vld [vmem:[%s685_s0] sm:$0xff]  ;;  %v35_v19 = vld [vmem:[%s685_s0 + $0x8] sm:$0xff]  ;;  %451 = vmatprep.subr.mxu1 %v492_v2  ;;  %444 = vmatprep.mubr.msk.f32.mxu0 %vm493_vm4, %v492_v2  ;;  %v75_v22 = vsel %vm63_vm1, %v584_v11, 0.0  ;;  %v91_v28 = vld [vmem:[%s687_s2 + $0x10] sm:$0xff] }
   0x6   :  { %v132_v20 = vld [vmem:[%s688_s3] sm:$0xff]  ;;  %v74_v21 = vadd.f32 %v73_v17, %v72_v16  ;;  %452 = vmatpush3.msra.mxu1 %v133_v4  ;;  %455 = vmatprep.mubr.msk.f32.mxu1 %vm493_vm4, %v492_v2  ;;  %v37_v24 = vsel %vm36_vm2, %v34_v18, 0.0  ;;  %v44_v25 = vsel %vm36_vm2, %v35_v19, 0.0  ;;  %v90_v27 = vld [vmem:[%s687_s2 + $0x8] sm:$0xff]  ;;  %v92_v32 = vld [vmem:[%s687_s2 + $0x18] sm:$0xff]  ;;  %v103_v38 = vsel %vm99_vm3, %v91_v28, 0.0 }
   0x7   :  { %v65_v23 = vadd.f32 %v64_v15, %v62_v14  ;;  %v89_v26 = vld [vmem:[%s687_s2] sm:$0xff]  ;;  %453 = vmatprep.subr.mxu1 %v492_v2  ;;  %458 = vmatprep.subr.mxu0 %v492_v2  ;;  %v38_v30 = vrot.slane %v37_v24, 4  ;;  %v45_v31 = vrot.slane %v44_v25, 4  ;;  %v94_v33 = vld [vmem:[%s687_s2 + $0x28] sm:$0xff]  ;;  %v101_v37 = vsel %vm99_vm3, %v90_v27, 0.0  ;;  %v95_v42 = vld [vmem:[%s687_s2 + $0x30] sm:$0xff] }
   0x8   :  { %v76_v29 = vadd.f32 %v75_v22, %v74_v21  ;;  %v100_v34 = vsel %vm99_vm3, %v89_v26, 0.0  ;;  %454 = vmatpush3.msra.mxu1 %v132_v20  ;;  %v93_v36 = vld [vmem:[%s687_s2 + $0x20] sm:$0xff]  ;;  %v96_v43 = vld [vmem:[%s687_s2 + $0x38] sm:$0xff] }
   0x9   :  { %v66_v35 = vrot.slane %v65_v23, 4  ;;  %v39_v40 = vadd.f32 %v38_v30, %v37_v24  ;;  %v46_v41 = vadd.f32 %v45_v31, %v44_v25  ;;  %v102_v44 = vadd.f32 %v101_v37, %v100_v34 }
   0xa   :  { %v77_v39 = vrot.slane %v76_v29, 4 }
   0xb   :  { %15 = vsyncpa [#allocation4], 0  ;;  %v67_v45 = vadd.f32 %v66_v35, %v65_v23  ;;  %v105_v46 = vsel %vm99_vm3, %v92_v32, 0.0  ;;  %v115_v47 = vsel %vm99_vm3, %v94_v33, 0.0  ;;  %v40_v49 = vrot.slane %v39_v40, 2  ;;  %v97_v51 = vld [vmem:[%s687_s2 + $0x40] sm:$0xff] }
   0xc   :  { %v78_v48 = vadd.f32 %v77_v39, %v76_v29  ;;  %v47_v50 = vrot.slane %v46_v41, 2  ;;  %v104_v52 = vadd.f32 %v103_v38, %v102_v44  ;;  %v107_v54 = vsel %vm99_vm3, %v93_v36, 0.0  ;;  %v98_v60 = vld [vmem:[%s687_s2 + $0x48] sm:$0xff]  ;;  %v293_v34 = vld [vmem:[%s690_s5 + $0x10] sm:$0xf] }
   0xd   :  { %v68_v53 = vrot.slane %v67_v45, 2  ;;  %v116_v55 = vsel %vm99_vm3, %v95_v42, 0.0  ;;  %v118_v56 = vsel %vm99_vm3, %v96_v43, 0.0  ;;  %v41_v58 = vadd.f32 %v40_v49, %v39_v40  ;;  %v292_v37 = vld [vmem:[%s690_s5 + $0x8] sm:$0xff]  ;;  %v291_v40 = vld [vmem:[%s690_s5] sm:$0xff] }
   0xe   :  { %v79_v57 = vrot.slane %v78_v48, 2  ;;  %v48_v59 = vadd.f32 %v47_v50, %v46_v41  ;;  %v106_v61 = vadd.f32 %v105_v46, %v104_v52  ;;  %v83_v63 = vmul.f32 4.0, %v571_v8  ;;  %v426_v52 = vld [vmem:[%s691_s6] ss:$0 sm:$0xff]  ;;  %s494_s6 = smov [#allocation3]  }
   0xf   :  { %v69_v62 = vadd.f32 %v68_v53, %v67_v45  ;;  %v117_v0 = vadd.f32 %v116_v55, %v115_v47  ;;  %v120_v1 = vsel %vm99_vm3, %v97_v51, 0.0  ;;  %v42_v4 = vrot.slane %v41_v58, 1  ;;  %v427_v55 = vld [vmem:[%s692_s7] ss:$0 sm:$0xff]  ;;  %s414_s17 = sshll.u32 %s494_s6, 4  ;;  %s415_s17 = int_to_ptr.vmem [resolvable:$true] %s414_s17 }
  0x10   :  { %v80_v3 = vadd.f32 %v79_v57, %v78_v48  ;;  %v49_v5 = vrot.slane %v48_v59, 1  ;;  %v108_v6 = vadd.f32 %v107_v54, %v106_v61  ;;  %v84_v9 = vmul.f32 4.0, %v584_v11  ;;  %s470_s7 = scalar_lea.vmem %s415_s17, 16  ;;  %s474_s18 = scalar_lea.vmem %s415_s17, 32 }
  0x11   :  { %v70_v7 = vrot.slane %v69_v62, 1  ;;  %v119_v10 = vadd.f32 %v118_v56, %v117_v0  ;;  %v122_v12 = vsel %vm99_vm3, %v98_v60, 0.0  ;;  %v43_v14 = vadd.f32 %v42_v4, %v41_v58  ;;  %p471_p0 = scmp.ne.s32.totalorder %s415_s17, %s470_s7  ;;  %p475_p1 = scmp.lt.s32.totalorder %s415_s17, %s415_s17 }
  0x12   :  { %v81_v13 = vrot.slane %v80_v3, 1  ;;  %v50_v15 = vadd.f32 %v49_v5, %v48_v59  ;;  %v109_v16 = vrot.slane %v108_v6, 4  ;;  %vm142_vm5 = vcmask 1041409   ;;  %p476_p2 = scmp.lt.s32.totalorder %s474_s18, %s470_s7 }
  0x13   :  { %v71_v17 = vadd.f32 %v70_v7, %v69_v62  ;;  %v121_v8 = vadd.f32 %v120_v1, %v119_v10  ;;  %v51_v19 = vmul.f32 0.125, %v43_v14  ;;  %vm299_vm6 = vcmask 1043456  }
  0x14   :  { %v82_v18 = vadd.f32 %v81_v13, %v80_v3  ;;  %v52_v20 = vmul.f32 0.125, %v50_v15  ;;  %v110_v21 = vadd.f32 %v109_v16, %v108_v6  ;;  %vm391_vm7 = vcmask 254976   ;;  %p477_p3 = por %p476_p2, %p475_p1 }
  0x15   :  { %v85_v22 = vadd.f32 %v83_v63, %v71_v17  ;;  %v123_v23 = vadd.f32 %v122_v12, %v121_v8  ;;  %v399_v59 = vlaneseq  ;;  %v396_v62 = vstv %s693_s8 }
  0x16   :  { %v86_v24 = vadd.f32 %v84_v9, %v82_v18  ;;  %v218_v25 = vsel %vm142_vm5, %v52_v20, %v51_v19  ;;  %v111_v11 = vrot.slane %v110_v21, 2  ;;  %vm406_vm8 = vcmask 8192   ;;  %p478_p4 = pnand %p477_p3, %p471_p0 }
  0x17   :  { %v87_v26 = vmul.f32 0.041666668, %v85_v22  ;;  %456 = vmatmul.mubr.msk.f32.vlgmr.msra.gmra.mxu1 %vm36_vm2, %v218_v25  ;;  %v124_v27 = vrot.slane %v123_v23, 4  ;;  %v400_v60 = vand.u32 127, %v399_v59  ;;  %v402_v61 = vshrl.u32 %v399_v59, 7 }
  0x18   :  { %v88_v28 = vmul.f32 0.041666668, %v86_v24  ;;  %v112_v29 = vadd.f32 %v111_v11, %v110_v21 }
  0x19   :  { %v140_v30 = vrot.slane %v87_v26, 3  ;;  %v125_v31 = vadd.f32 %v124_v27, %v123_v23  ;;  %v403_v63 = vsub.s32 %v400_v60, %v402_v61 }
  0x1a   :  { %v141_v32 = vrot.slane %v88_v28, 2  ;;  %v113_v33 = vrot.slane %v112_v29, 1 }
  0x1b   :  { %v126_v35 = vrot.slane %v125_v31, 2 }
  0x1c   :  { %v143_v36 = vsel %vm142_vm5, %v141_v32, %v140_v30  ;;  %v114_v38 = vadd.f32 %v113_v33, %v112_v29 }
  0x1d   :  { %445 = vmatmul.mubr.msk.f32.vlgmr.msra.gmra.mxu0 %vm59_vm0, %v143_v36  ;;  %v127_v39 = vadd.f32 %v126_v35, %v125_v31 }
  0x1e   :  { %459 = vmatpush3.msk.msra.mxu0 %vm299_vm6, %v293_v34  ;;  %464 = vmatprep.mubr.msk.f32.mxu0 %vm493_vm4, %v492_v2  ;;  %v130_v43 = vmul.f32 0.025, %v114_v38 }
  0x1f   :  { %460 = vmatprep.subr.mxu0 %v492_v2  ;;  %v128_v41 = vrot.slane %v127_v39, 1 }
  0x20   :  { %461 = vmatpush3.msra.mxu0 %v292_v37 }
  0x21   :  { %462 = vmatprep.subr.mxu0 %v492_v2  ;;  %v129_v42 = vadd.f32 %v128_v41, %v127_v39 }
  0x22   :  { %463 = vmatpush3.msra.mxu0 %v291_v40 }
  0x23   :  { %v131_v44 = vmul.f32 0.025, %v129_v42 }
  0x25   :  { %v296_v45 = vsel %vm142_vm5, %v131_v44, %v130_v43 }
  0x26   :  { %465 = vmatmul.mubr.msk.f32.vlgmr.msra.gmra.mxu0 %vm99_vm3, %v296_v45 }
  0xd7   :  { %v287_v46 = vpop.f32.mrf.mxu1 }
  0xd9   :  { %v457_v47 = vpop.f32.mrf.mxu1 }
  0xdd   :  { %v212_v48 = vpop.f32.mrf.mxu0 }
  0xde   :  { %v288_v50 = vadd.f32 %v287_v46, %v212_v48 }
  0xdf   :  { %v446_v49 = vpop.f32.mrf.mxu0 }
  0xe6   :  { %v369_v51 = vpop.f32.mrf.mxu0 }
  0xe7   :  { %v373_v53 = vadd.f32 %v369_v51, %v288_v50 }
  0xe8   :  { %v466_v2 = vpop.f32.mrf.mxu0 }
  0xe9   :  { %v381_v54 = vadd.f32 %v426_v52, %v373_v53 }
  0xeb   :  { %v382_v56 = vmax.f32 %v381_v54, 0.0 }
  0xed   :  { %v390_v57 = vmul.f32 %v427_v55, %v382_v56 }
  0xef   :  { %v392_v58 = vsel %vm391_vm7, %v390_v57, 0.0 }
  0xf0   :  { %393 = vadd.xlane.f32.xlu0 %v392_v58 }
 0x179   :  { %v394_v0 = vpop.xlane.xlu0 %393 }
 0x17a   :  { %v397_v1 = vadd.f32 %v396_v62, %v394_v0 }
 0x17c   :  { %v404_v3 = vrot.slane %v397_v1, %v403_v63 }
 0x17e   :  { %407 = vst.msk [vmem:[#allocation3] sm:$0x1] %vm406_vm8, %v404_v3 }
 0x17f   :  { %481 = shalt.err (!%p478_p4)
}
 0x180   :  { %417 = dma.vmem_to_hbm [thread:$0]  %s415_s17, 16, %s694_s9, [#allocation4]  }
 0x181   :  { %490 = dma.done.wait [#allocation4], 16  }
 0x182   :  { %491 = vsyncadd [#allocation4], 4294967280 }
 0x183   :  { %421 = vsyncpa [#allocation4], 1 }

</bundles_post_ra>
